<compile_context>
chip_gen: v6e
topology: v6e:2x2x1
jax: 0.10.0
libtpu: 0.0.40
codegen_flags: <defaults>
</compile_context>

<pallas_src>
import functools

import jax
import jax.numpy as jnp
from jax.experimental import pallas as pl
from jax.experimental.pallas import tpu as pltpu


def _rnn_fc_kernel(x_ref, w_ih_ref, w_hh_ref, bias_ref, w_fc_ref, b_fc_ref,
                   out_ref, *, num_layers, seq_len, batch, n_future):
    """Stacked tanh-RNN recurrence (wavefronted over layers) + final Linear.

    x_ref    : (S*B, D)  time-major 2-D input; row t*B + b == x[b, t, :]
    w_ih_ref : (L, D, D) input->hidden weights, pre-transposed to (in, hid)
    w_hh_ref : (L, D, D) hidden->hidden weights, pre-transposed
    bias_ref : (L, 1, D) b_ih + b_hh (folded once in the wrapper)
    w_fc_ref : (D, O)    fc weight, pre-transposed
    b_fc_ref : (1, O)
    out_ref  : (n_future*B, O)  row index = t*B + b over the last n_future steps
    """
    L, S, B = num_layers, seq_len, batch
    D = w_fc_ref.shape[0]

    # Hoisted layer-0 input projection: one (S*B, D) x (D, D) MXU matmul covering all
    # timesteps, kept entirely in vregs (no VMEM store / per-step reload).
    pre0 = jnp.dot(x_ref[...], w_ih_ref[0],
                   preferred_element_type=jnp.float32) + bias_ref[0]      # (S*B, D)

    # Wavefronted recurrence: layer l processes step t = wave - l.  Within a wave the
    # active steps only depend on values produced in earlier waves, so their matmuls
    # are independent and can be in flight simultaneously (hides the MXU fill/drain
    # latency of the tiny (B,D)x(D,D) dots).  Deepest layer first within a wave so
    # layer l reads layer l-1's step-t output before it is overwritten.
    h = [jnp.zeros((B, D), jnp.float32) for _ in range(L)]
    outs_last = []                                   # final layer's per-step outputs
    for wave in range(S + L - 1):
        for l in reversed(range(L)):
            t = wave - l
            if not (0 <= t < S):
                continue
            if l == 0:
                z = jnp.dot(h[0], w_hh_ref[0], preferred_element_type=jnp.float32)
                z = z + pre0[t * B:(t + 1) * B, :]   # static, 8-sublane-aligned slice
            else:
                # Input projection of layer l-1's step-t output plus the recurrent
                # term; the two dots are independent (only the w_hh one sits on layer
                # l's serial critical path).
                z = (jnp.dot(h[l - 1], w_ih_ref[l], preferred_element_type=jnp.float32)
                     + jnp.dot(h[l], w_hh_ref[l], preferred_element_type=jnp.float32)
                     + bias_ref[l])
            h[l] = jnp.tanh(z)
            if l == L - 1:
                outs_last.append(h[l])

    # TODO(synk): nn.Dropout(p=0.005535) is stochastic in train mode; eval-mode
    # identity here (training parity would need pltpu.prng_seed + prng_random_bits).
    # TODO(synk): for large D, stage w_hh once per layer via pltpu.matmul_push_rhs /
    # matmul_acc_lhs / matmul_pop instead of re-pushing the same RHS every step.

    # Final Linear over the last n_future steps as one (n_future*B, D) x (D, O) matmul.
    # TODO(synk): if production O grows, keep it a multiple of 128 for lane-dense vst.
    last = jnp.concatenate(outs_last[-n_future:], axis=0)       # (n_future*B, D)
    out = jnp.dot(last, w_fc_ref[...],
                  preferred_element_type=jnp.float32) + b_fc_ref[...]
    out_ref[...] = out.astype(out_ref.dtype)


def simple_rnn_forward(x, params, *, n_future):
    """x: (B, S, D) float32 (batch_first, like PyTorch). Returns (B, n_future, O)."""
    w_ih, w_hh, b_ih, b_hh, w_fc, b_fc = (
        params['w_ih'], params['w_hh'], params['b_ih'],
        params['b_hh'], params['w_fc'], params['b_fc'])
    B, S, D = x.shape
    L = w_ih.shape[0]
    O = w_fc.shape[1]

    # Native 2-D time-major layout for the kernel: row t*B + b == x[b, t, :].
    # TODO(synk): this transpose and the output one below could move in-kernel
    # (pltpu.einshape) to shave two wrapper HLO ops once verified on the target
    # Mosaic version; kept in the wrapper here for lowering safety.
    x_2d = jnp.transpose(x, (1, 0, 2)).reshape(S * B, D)
    bias = b_ih + b_hh                       # fold once, outside the kernel

    kernel = functools.partial(_rnn_fc_kernel, num_layers=L, seq_len=S,
                               batch=B, n_future=n_future)

    # Everything resident in VMEM, no grid: the whole problem is a few KiB.
    # TODO(synk): for production sizes add a batch grid axis with
    # dimension_semantics=("parallel",) (v7x: 2 TensorCores) and budget VMEM via
    # pltpu.CompilerParams(vmem_limit_bytes=...) per generation (v5e scoped default
    # 16 MiB; v7x physical VMEM is 64 MiB).
    out_flat = pl.pallas_call(
        kernel,
        out_shape=jax.ShapeDtypeStruct((n_future * B, O), jnp.float32),
        in_specs=[pl.BlockSpec(memory_space=pltpu.MemorySpace.VMEM)] * 6,
        out_specs=pl.BlockSpec(memory_space=pltpu.MemorySpace.VMEM),
    )(x_2d, w_ih, w_hh, bias, w_fc, b_fc)

    # rows are ordered (t, b) over the last n_future steps -> (B, n_future, O)
    return jnp.transpose(out_flat.reshape(n_future, B, O), (1, 0, 2))


def reference_forward(x, params, *, n_future):
    """Pure-JAX reference matching PyTorch nn.RNN + Linear semantics."""
    w_ih, w_hh, b_ih, b_hh, w_fc, b_fc = (
        params['w_ih'], params['w_hh'], params['b_ih'],
        params['b_hh'], params['w_fc'], params['b_fc'])
    B, S, D = x.shape
    L = w_ih.shape[0]
    seq = x
    for l in range(L):
        h = jnp.zeros((B, D), jnp.float32)
        outs = []
        for t in range(S):
            h = jnp.tanh(seq[:, t, :] @ w_ih[l] + h @ w_hh[l]
                         + b_ih[l] + b_hh[l])
            outs.append(h)
        seq = jnp.stack(outs, axis=1)
    last = seq[:, S - n_future:, :]
    return jnp.einsum('btd,do->bto', last, w_fc) + b_fc[None, :, :]


def init_params(key, in_dim, out_dim, num_layers):
    """Deterministic init mirroring nn.RNN / nn.Linear shapes (hid_dim = in_dim)."""
    hid = in_dim
    k = 1.0 / jnp.sqrt(jnp.float32(hid))
    keys = jax.random.split(key, 6)
    # PyTorch stores weight_ih_l as (hid, in); we pre-transpose to (in, hid).
    w_ih = jax.random.uniform(keys[0], (num_layers, in_dim, hid), jnp.float32, -k, k)
    w_hh = jax.random.uniform(keys[1], (num_layers, hid, hid), jnp.float32, -k, k)
    b_ih = jax.random.uniform(keys[2], (num_layers, 1, hid), jnp.float32, -k, k)
    b_hh = jax.random.uniform(keys[3], (num_layers, 1, hid), jnp.float32, -k, k)
    w_fc = jax.random.uniform(keys[4], (hid, out_dim), jnp.float32, -k, k)
    b_fc = jax.random.uniform(keys[5], (1, out_dim), jnp.float32, -k, k)
    return dict(w_ih=w_ih, w_hh=w_hh, b_ih=b_ih, b_hh=b_hh, w_fc=w_fc, b_fc=b_fc)


if __name__ == "__main__":
    # Small shapes consistent with the module's forward (hid_dim = in_dim).
    # B=8 keeps every (B, D) timestep slab an exactly aligned 8-sublane group.
    BATCH, SEQ, IN_DIM = 8, 8, 32
    OUT_DIM, NUM_LAYERS, N_FUTURE = 8, 2, 4   # n_future is a module-level global in the source

    key = jax.random.PRNGKey(0)
    kx, kp = jax.random.split(key)
    x = jax.random.normal(kx, (BATCH, SEQ, IN_DIM), jnp.float32)
    params = init_params(kp, IN_DIM, OUT_DIM, NUM_LAYERS)

    out = simple_rnn_forward(x, params, n_future=N_FUTURE)
    out = jax.block_until_ready(out)

    ref = reference_forward(x, params, n_future=N_FUTURE)
    assert out.shape == (BATCH, N_FUTURE, OUT_DIM), out.shape
    assert jnp.allclose(out, ref, atol=1e-5, rtol=1e-5), \
        float(jnp.max(jnp.abs(out - ref)))

    print("KERNEL_OK")
</pallas_src>

<mosaic_0001>
module attributes {stable_mosaic.version = 11 : i64} {
  func.func @_rnn_fc_kernel(%arg0: memref<64x32xf32, #tpu.memory_space<vmem>>, %arg1: memref<2x32x32xf32, #tpu.memory_space<vmem>>, %arg2: memref<2x32x32xf32, #tpu.memory_space<vmem>>, %arg3: memref<2x1x32xf32, #tpu.memory_space<vmem>>, %arg4: memref<32x8xf32, #tpu.memory_space<vmem>>, %arg5: memref<1x8xf32, #tpu.memory_space<vmem>>, %arg6: memref<32x8xf32, #tpu.memory_space<vmem>>) attributes {dimension_semantics = [], scalar_prefetch = 0 : i64, scratch_operands = 0 : i64, tpu.core_type = #tpu.core_type<tc>} {
    %c0 = arith.constant 0 : index
    %c0_0 = arith.constant 0 : index
    %0 = vector.load %arg0[%c0, %c0_0] : memref<64x32xf32, #tpu.memory_space<vmem>>, vector<64x32xf32>
    %c0_1 = arith.constant 0 : index
    %c0_2 = arith.constant 0 : index
    %c0_3 = arith.constant 0 : index
    %1 = vector.load %arg1[%c0_1, %c0_2, %c0_3] : memref<2x32x32xf32, #tpu.memory_space<vmem>>, vector<1x32x32xf32>
    %2 = vector.shape_cast %1 : vector<1x32x32xf32> to vector<32x32xf32>
    %cst = arith.constant dense<0.000000e+00> : vector<64x32xf32>
    %3 = tpu.matmul %0, %2, %cst {dimension_numbers = #tpu.dot_dimension_numbers<[1], [0], [0], [1], [0, 0, 1, 1], [], []>} : vector<64x32xf32>, vector<32x32xf32>, vector<64x32xf32> -> vector<64x32xf32>
    %c0_4 = arith.constant 0 : index
    %c0_5 = arith.constant 0 : index
    %c0_6 = arith.constant 0 : index
    %4 = vector.load %arg3[%c0_4, %c0_5, %c0_6] : memref<2x1x32xf32, #tpu.memory_space<vmem>>, vector<1x1x32xf32>
    %5 = vector.shape_cast %4 : vector<1x1x32xf32> to vector<1x32xf32>
    %6 = vector.broadcast %5 : vector<1x32xf32> to vector<64x32xf32>
    %7 = arith.addf %3, %6 : vector<64x32xf32>
    %cst_7 = arith.constant 0.000000e+00 : f32
    %8 = vector.broadcast %cst_7 : f32 to vector<8x32xf32>
    %cst_8 = arith.constant 0.000000e+00 : f32
    %9 = vector.broadcast %cst_8 : f32 to vector<8x32xf32>
    %c0_9 = arith.constant 0 : index
    %c0_10 = arith.constant 0 : index
    %c0_11 = arith.constant 0 : index
    %10 = vector.load %arg2[%c0_9, %c0_10, %c0_11] : memref<2x32x32xf32, #tpu.memory_space<vmem>>, vector<1x32x32xf32>
    %11 = vector.shape_cast %10 : vector<1x32x32xf32> to vector<32x32xf32>
    %cst_12 = arith.constant dense<0.000000e+00> : vector<8x32xf32>
    %12 = tpu.matmul %8, %11, %cst_12 {dimension_numbers = #tpu.dot_dimension_numbers<[1], [0], [0], [1], [0, 0, 1, 1], [], []>} : vector<8x32xf32>, vector<32x32xf32>, vector<8x32xf32> -> vector<8x32xf32>
    %13 = vector.extract_strided_slice %7 {offsets = [0, 0], sizes = [8, 32], strides = [1, 1]} : vector<64x32xf32> to vector<8x32xf32>
    %14 = arith.addf %12, %13 : vector<8x32xf32>
    %15 = math.tanh %14 : vector<8x32xf32>
    %c1 = arith.constant 1 : index
    %c0_13 = arith.constant 0 : index
    %c0_14 = arith.constant 0 : index
    %16 = vector.load %arg1[%c1, %c0_13, %c0_14] : memref<2x32x32xf32, #tpu.memory_space<vmem>>, vector<1x32x32xf32>
    %17 = vector.shape_cast %16 : vector<1x32x32xf32> to vector<32x32xf32>
    %cst_15 = arith.constant dense<0.000000e+00> : vector<8x32xf32>
    %18 = tpu.matmul %15, %17, %cst_15 {dimension_numbers = #tpu.dot_dimension_numbers<[1], [0], [0], [1], [0, 0, 1, 1], [], []>} : vector<8x32xf32>, vector<32x32xf32>, vector<8x32xf32> -> vector<8x32xf32>
    %c1_16 = arith.constant 1 : index
    %c0_17 = arith.constant 0 : index
    %c0_18 = arith.constant 0 : index
    %19 = vector.load %arg2[%c1_16, %c0_17, %c0_18] : memref<2x32x32xf32, #tpu.memory_space<vmem>>, vector<1x32x32xf32>
    %20 = vector.shape_cast %19 : vector<1x32x32xf32> to vector<32x32xf32>
    %cst_19 = arith.constant dense<0.000000e+00> : vector<8x32xf32>
    %21 = tpu.matmul %9, %20, %cst_19 {dimension_numbers = #tpu.dot_dimension_numbers<[1], [0], [0], [1], [0, 0, 1, 1], [], []>} : vector<8x32xf32>, vector<32x32xf32>, vector<8x32xf32> -> vector<8x32xf32>
    %22 = arith.addf %18, %21 : vector<8x32xf32>
    %c1_20 = arith.constant 1 : index
    %c0_21 = arith.constant 0 : index
    %c0_22 = arith.constant 0 : index
    %23 = vector.load %arg3[%c1_20, %c0_21, %c0_22] : memref<2x1x32xf32, #tpu.memory_space<vmem>>, vector<1x1x32xf32>
    %24 = vector.shape_cast %23 : vector<1x1x32xf32> to vector<1x32xf32>
    %25 = vector.broadcast %24 : vector<1x32xf32> to vector<8x32xf32>
    %26 = arith.addf %22, %25 : vector<8x32xf32>
    %27 = math.tanh %26 : vector<8x32xf32>
    %c0_23 = arith.constant 0 : index
    %c0_24 = arith.constant 0 : index
    %c0_25 = arith.constant 0 : index
    %28 = vector.load %arg2[%c0_23, %c0_24, %c0_25] : memref<2x32x32xf32, #tpu.memory_space<vmem>>, vector<1x32x32xf32>
    %29 = vector.shape_cast %28 : vector<1x32x32xf32> to vector<32x32xf32>
    %cst_26 = arith.constant dense<0.000000e+00> : vector<8x32xf32>
    %30 = tpu.matmul %15, %29, %cst_26 {dimension_numbers = #tpu.dot_dimension_numbers<[1], [0], [0], [1], [0, 0, 1, 1], [], []>} : vector<8x32xf32>, vector<32x32xf32>, vector<8x32xf32> -> vector<8x32xf32>
    %31 = vector.extract_strided_slice %7 {offsets = [8, 0], sizes = [8, 32], strides = [1, 1]} : vector<64x32xf32> to vector<8x32xf32>
    %32 = arith.addf %30, %31 : vector<8x32xf32>
    %33 = math.tanh %32 : vector<8x32xf32>
    %c1_27 = arith.constant 1 : index
    %c0_28 = arith.constant 0 : index
    %c0_29 = arith.constant 0 : index
    %34 = vector.load %arg1[%c1_27, %c0_28, %c0_29] : memref<2x32x32xf32, #tpu.memory_space<vmem>>, vector<1x32x32xf32>
    %35 = vector.shape_cast %34 : vector<1x32x32xf32> to vector<32x32xf32>
    %cst_30 = arith.constant dense<0.000000e+00> : vector<8x32xf32>
    %36 = tpu.matmul %33, %35, %cst_30 {dimension_numbers = #tpu.dot_dimension_numbers<[1], [0], [0], [1], [0, 0, 1, 1], [], []>} : vector<8x32xf32>, vector<32x32xf32>, vector<8x32xf32> -> vector<8x32xf32>
    %c1_31 = arith.constant 1 : index
    %c0_32 = arith.constant 0 : index
    %c0_33 = arith.constant 0 : index
    %37 = vector.load %arg2[%c1_31, %c0_32, %c0_33] : memref<2x32x32xf32, #tpu.memory_space<vmem>>, vector<1x32x32xf32>
    %38 = vector.shape_cast %37 : vector<1x32x32xf32> to vector<32x32xf32>
    %cst_34 = arith.constant dense<0.000000e+00> : vector<8x32xf32>
    %39 = tpu.matmul %27, %38, %cst_34 {dimension_numbers = #tpu.dot_dimension_numbers<[1], [0], [0], [1], [0, 0, 1, 1], [], []>} : vector<8x32xf32>, vector<32x32xf32>, vector<8x32xf32> -> vector<8x32xf32>
    %40 = arith.addf %36, %39 : vector<8x32xf32>
    %c1_35 = arith.constant 1 : index
    %c0_36 = arith.constant 0 : index
    %c0_37 = arith.constant 0 : index
    %41 = vector.load %arg3[%c1_35, %c0_36, %c0_37] : memref<2x1x32xf32, #tpu.memory_space<vmem>>, vector<1x1x32xf32>
    %42 = vector.shape_cast %41 : vector<1x1x32xf32> to vector<1x32xf32>
    %43 = vector.broadcast %42 : vector<1x32xf32> to vector<8x32xf32>
    %44 = arith.addf %40, %43 : vector<8x32xf32>
    %45 = math.tanh %44 : vector<8x32xf32>
    %c0_38 = arith.constant 0 : index
    %c0_39 = arith.constant 0 : index
    %c0_40 = arith.constant 0 : index
    %46 = vector.load %arg2[%c0_38, %c0_39, %c0_40] : memref<2x32x32xf32, #tpu.memory_space<vmem>>, vector<1x32x32xf32>
    %47 = vector.shape_cast %46 : vector<1x32x32xf32> to vector<32x32xf32>
    %cst_41 = arith.constant dense<0.000000e+00> : vector<8x32xf32>
    %48 = tpu.matmul %33, %47, %cst_41 {dimension_numbers = #tpu.dot_dimension_numbers<[1], [0], [0], [1], [0, 0, 1, 1], [], []>} : vector<8x32xf32>, vector<32x32xf32>, vector<8x32xf32> -> vector<8x32xf32>
    %49 = vector.extract_strided_slice %7 {offsets = [16, 0], sizes = [8, 32], strides = [1, 1]} : vector<64x32xf32> to vector<8x32xf32>
    %50 = arith.addf %48, %49 : vector<8x32xf32>
    %51 = math.tanh %50 : vector<8x32xf32>
    %c1_42 = arith.constant 1 : index
    %c0_43 = arith.constant 0 : index
    %c0_44 = arith.constant 0 : index
    %52 = vector.load %arg1[%c1_42, %c0_43, %c0_44] : memref<2x32x32xf32, #tpu.memory_space<vmem>>, vector<1x32x32xf32>
    %53 = vector.shape_cast %52 : vector<1x32x32xf32> to vector<32x32xf32>
    %cst_45 = arith.constant dense<0.000000e+00> : vector<8x32xf32>
    %54 = tpu.matmul %51, %53, %cst_45 {dimension_numbers = #tpu.dot_dimension_numbers<[1], [0], [0], [1], [0, 0, 1, 1], [], []>} : vector<8x32xf32>, vector<32x32xf32>, vector<8x32xf32> -> vector<8x32xf32>
    %c1_46 = arith.constant 1 : index
    %c0_47 = arith.constant 0 : index
    %c0_48 = arith.constant 0 : index
    %55 = vector.load %arg2[%c1_46, %c0_47, %c0_48] : memref<2x32x32xf32, #tpu.memory_space<vmem>>, vector<1x32x32xf32>
    %56 = vector.shape_cast %55 : vector<1x32x32xf32> to vector<32x32xf32>
    %cst_49 = arith.constant dense<0.000000e+00> : vector<8x32xf32>
    %57 = tpu.matmul %45, %56, %cst_49 {dimension_numbers = #tpu.dot_dimension_numbers<[1], [0], [0], [1], [0, 0, 1, 1], [], []>} : vector<8x32xf32>, vector<32x32xf32>, vector<8x32xf32> -> vector<8x32xf32>
    %58 = arith.addf %54, %57 : vector<8x32xf32>
    %c1_50 = arith.constant 1 : index
    %c0_51 = arith.constant 0 : index
    %c0_52 = arith.constant 0 : index
    %59 = vector.load %arg3[%c1_50, %c0_51, %c0_52] : memref<2x1x32xf32, #tpu.memory_space<vmem>>, vector<1x1x32xf32>
    %60 = vector.shape_cast %59 : vector<1x1x32xf32> to vector<1x32xf32>
    %61 = vector.broadcast %60 : vector<1x32xf32> to vector<8x32xf32>
    %62 = arith.addf %58, %61 : vector<8x32xf32>
    %63 = math.tanh %62 : vector<8x32xf32>
    %c0_53 = arith.constant 0 : index
    %c0_54 = arith.constant 0 : index
    %c0_55 = arith.constant 0 : index
    %64 = vector.load %arg2[%c0_53, %c0_54, %c0_55] : memref<2x32x32xf32, #tpu.memory_space<vmem>>, vector<1x32x32xf32>
    %65 = vector.shape_cast %64 : vector<1x32x32xf32> to vector<32x32xf32>
    %cst_56 = arith.constant dense<0.000000e+00> : vector<8x32xf32>
    %66 = tpu.matmul %51, %65, %cst_56 {dimension_numbers = #tpu.dot_dimension_numbers<[1], [0], [0], [1], [0, 0, 1, 1], [], []>} : vector<8x32xf32>, vector<32x32xf32>, vector<8x32xf32> -> vector<8x32xf32>
    %67 = vector.extract_strided_slice %7 {offsets = [24, 0], sizes = [8, 32], strides = [1, 1]} : vector<64x32xf32> to vector<8x32xf32>
    %68 = arith.addf %66, %67 : vector<8x32xf32>
    %69 = math.tanh %68 : vector<8x32xf32>
    %c1_57 = arith.constant 1 : index
    %c0_58 = arith.constant 0 : index
    %c0_59 = arith.constant 0 : index
    %70 = vector.load %arg1[%c1_57, %c0_58, %c0_59] : memref<2x32x32xf32, #tpu.memory_space<vmem>>, vector<1x32x32xf32>
    %71 = vector.shape_cast %70 : vector<1x32x32xf32> to vector<32x32xf32>
    %cst_60 = arith.constant dense<0.000000e+00> : vector<8x32xf32>
    %72 = tpu.matmul %69, %71, %cst_60 {dimension_numbers = #tpu.dot_dimension_numbers<[1], [0], [0], [1], [0, 0, 1, 1], [], []>} : vector<8x32xf32>, vector<32x32xf32>, vector<8x32xf32> -> vector<8x32xf32>
    %c1_61 = arith.constant 1 : index
    %c0_62 = arith.constant 0 : index
    %c0_63 = arith.constant 0 : index
    %73 = vector.load %arg2[%c1_61, %c0_62, %c0_63] : memref<2x32x32xf32, #tpu.memory_space<vmem>>, vector<1x32x32xf32>
    %74 = vector.shape_cast %73 : vector<1x32x32xf32> to vector<32x32xf32>
    %cst_64 = arith.constant dense<0.000000e+00> : vector<8x32xf32>
    %75 = tpu.matmul %63, %74, %cst_64 {dimension_numbers = #tpu.dot_dimension_numbers<[1], [0], [0], [1], [0, 0, 1, 1], [], []>} : vector<8x32xf32>, vector<32x32xf32>, vector<8x32xf32> -> vector<8x32xf32>
    %76 = arith.addf %72, %75 : vector<8x32xf32>
    %c1_65 = arith.constant 1 : index
    %c0_66 = arith.constant 0 : index
    %c0_67 = arith.constant 0 : index
    %77 = vector.load %arg3[%c1_65, %c0_66, %c0_67] : memref<2x1x32xf32, #tpu.memory_space<vmem>>, vector<1x1x32xf32>
    %78 = vector.shape_cast %77 : vector<1x1x32xf32> to vector<1x32xf32>
    %79 = vector.broadcast %78 : vector<1x32xf32> to vector<8x32xf32>
    %80 = arith.addf %76, %79 : vector<8x32xf32>
    %81 = math.tanh %80 : vector<8x32xf32>
    %c0_68 = arith.constant 0 : index
    %c0_69 = arith.constant 0 : index
    %c0_70 = arith.constant 0 : index
    %82 = vector.load %arg2[%c0_68, %c0_69, %c0_70] : memref<2x32x32xf32, #tpu.memory_space<vmem>>, vector<1x32x32xf32>
    %83 = vector.shape_cast %82 : vector<1x32x32xf32> to vector<32x32xf32>
    %cst_71 = arith.constant dense<0.000000e+00> : vector<8x32xf32>
    %84 = tpu.matmul %69, %83, %cst_71 {dimension_numbers = #tpu.dot_dimension_numbers<[1], [0], [0], [1], [0, 0, 1, 1], [], []>} : vector<8x32xf32>, vector<32x32xf32>, vector<8x32xf32> -> vector<8x32xf32>
    %85 = vector.extract_strided_slice %7 {offsets = [32, 0], sizes = [8, 32], strides = [1, 1]} : vector<64x32xf32> to vector<8x32xf32>
    %86 = arith.addf %84, %85 : vector<8x32xf32>
    %87 = math.tanh %86 : vector<8x32xf32>
    %c1_72 = arith.constant 1 : index
    %c0_73 = arith.constant 0 : index
    %c0_74 = arith.constant 0 : index
    %88 = vector.load %arg1[%c1_72, %c0_73, %c0_74] : memref<2x32x32xf32, #tpu.memory_space<vmem>>, vector<1x32x32xf32>
    %89 = vector.shape_cast %88 : vector<1x32x32xf32> to vector<32x32xf32>
    %cst_75 = arith.constant dense<0.000000e+00> : vector<8x32xf32>
    %90 = tpu.matmul %87, %89, %cst_75 {dimension_numbers = #tpu.dot_dimension_numbers<[1], [0], [0], [1], [0, 0, 1, 1], [], []>} : vector<8x32xf32>, vector<32x32xf32>, vector<8x32xf32> -> vector<8x32xf32>
    %c1_76 = arith.constant 1 : index
    %c0_77 = arith.constant 0 : index
    %c0_78 = arith.constant 0 : index
    %91 = vector.load %arg2[%c1_76, %c0_77, %c0_78] : memref<2x32x32xf32, #tpu.memory_space<vmem>>, vector<1x32x32xf32>
    %92 = vector.shape_cast %91 : vector<1x32x32xf32> to vector<32x32xf32>
    %cst_79 = arith.constant dense<0.000000e+00> : vector<8x32xf32>
    %93 = tpu.matmul %81, %92, %cst_79 {dimension_numbers = #tpu.dot_dimension_numbers<[1], [0], [0], [1], [0, 0, 1, 1], [], []>} : vector<8x32xf32>, vector<32x32xf32>, vector<8x32xf32> -> vector<8x32xf32>
    %94 = arith.addf %90, %93 : vector<8x32xf32>
    %c1_80 = arith.constant 1 : index
    %c0_81 = arith.constant 0 : index
    %c0_82 = arith.constant 0 : index
    %95 = vector.load %arg3[%c1_80, %c0_81, %c0_82] : memref<2x1x32xf32, #tpu.memory_space<vmem>>, vector<1x1x32xf32>
    %96 = vector.shape_cast %95 : vector<1x1x32xf32> to vector<1x32xf32>
    %97 = vector.broadcast %96 : vector<1x32xf32> to vector<8x32xf32>
    %98 = arith.addf %94, %97 : vector<8x32xf32>
    %99 = math.tanh %98 : vector<8x32xf32>
    %c0_83 = arith.constant 0 : index
    %c0_84 = arith.constant 0 : index
    %c0_85 = arith.constant 0 : index
    %100 = vector.load %arg2[%c0_83, %c0_84, %c0_85] : memref<2x32x32xf32, #tpu.memory_space<vmem>>, vector<1x32x32xf32>
    %101 = vector.shape_cast %100 : vector<1x32x32xf32> to vector<32x32xf32>
    %cst_86 = arith.constant dense<0.000000e+00> : vector<8x32xf32>
    %102 = tpu.matmul %87, %101, %cst_86 {dimension_numbers = #tpu.dot_dimension_numbers<[1], [0], [0], [1], [0, 0, 1, 1], [], []>} : vector<8x32xf32>, vector<32x32xf32>, vector<8x32xf32> -> vector<8x32xf32>
    %103 = vector.extract_strided_slice %7 {offsets = [40, 0], sizes = [8, 32], strides = [1, 1]} : vector<64x32xf32> to vector<8x32xf32>
    %104 = arith.addf %102, %103 : vector<8x32xf32>
    %105 = math.tanh %104 : vector<8x32xf32>
    %c1_87 = arith.constant 1 : index
    %c0_88 = arith.constant 0 : index
    %c0_89 = arith.constant 0 : index
    %106 = vector.load %arg1[%c1_87, %c0_88, %c0_89] : memref<2x32x32xf32, #tpu.memory_space<vmem>>, vector<1x32x32xf32>
    %107 = vector.shape_cast %106 : vector<1x32x32xf32> to vector<32x32xf32>
    %cst_90 = arith.constant dense<0.000000e+00> : vector<8x32xf32>
    %108 = tpu.matmul %105, %107, %cst_90 {dimension_numbers = #tpu.dot_dimension_numbers<[1], [0], [0], [1], [0, 0, 1, 1], [], []>} : vector<8x32xf32>, vector<32x32xf32>, vector<8x32xf32> -> vector<8x32xf32>
    %c1_91 = arith.constant 1 : index
    %c0_92 = arith.constant 0 : index
    %c0_93 = arith.constant 0 : index
    %109 = vector.load %arg2[%c1_91, %c0_92, %c0_93] : memref<2x32x32xf32, #tpu.memory_space<vmem>>, vector<1x32x32xf32>
    %110 = vector.shape_cast %109 : vector<1x32x32xf32> to vector<32x32xf32>
    %cst_94 = arith.constant dense<0.000000e+00> : vector<8x32xf32>
    %111 = tpu.matmul %99, %110, %cst_94 {dimension_numbers = #tpu.dot_dimension_numbers<[1], [0], [0], [1], [0, 0, 1, 1], [], []>} : vector<8x32xf32>, vector<32x32xf32>, vector<8x32xf32> -> vector<8x32xf32>
    %112 = arith.addf %108, %111 : vector<8x32xf32>
    %c1_95 = arith.constant 1 : index
    %c0_96 = arith.constant 0 : index
    %c0_97 = arith.constant 0 : index
    %113 = vector.load %arg3[%c1_95, %c0_96, %c0_97] : memref<2x1x32xf32, #tpu.memory_space<vmem>>, vector<1x1x32xf32>
    %114 = vector.shape_cast %113 : vector<1x1x32xf32> to vector<1x32xf32>
    %115 = vector.broadcast %114 : vector<1x32xf32> to vector<8x32xf32>
    %116 = arith.addf %112, %115 : vector<8x32xf32>
    %117 = math.tanh %116 : vector<8x32xf32>
    %c0_98 = arith.constant 0 : index
    %c0_99 = arith.constant 0 : index
    %c0_100 = arith.constant 0 : index
    %118 = vector.load %arg2[%c0_98, %c0_99, %c0_100] : memref<2x32x32xf32, #tpu.memory_space<vmem>>, vector<1x32x32xf32>
    %119 = vector.shape_cast %118 : vector<1x32x32xf32> to vector<32x32xf32>
    %cst_101 = arith.constant dense<0.000000e+00> : vector<8x32xf32>
    %120 = tpu.matmul %105, %119, %cst_101 {dimension_numbers = #tpu.dot_dimension_numbers<[1], [0], [0], [1], [0, 0, 1, 1], [], []>} : vector<8x32xf32>, vector<32x32xf32>, vector<8x32xf32> -> vector<8x32xf32>
    %121 = vector.extract_strided_slice %7 {offsets = [48, 0], sizes = [8, 32], strides = [1, 1]} : vector<64x32xf32> to vector<8x32xf32>
    %122 = arith.addf %120, %121 : vector<8x32xf32>
    %123 = math.tanh %122 : vector<8x32xf32>
    %c1_102 = arith.constant 1 : index
    %c0_103 = arith.constant 0 : index
    %c0_104 = arith.constant 0 : index
    %124 = vector.load %arg1[%c1_102, %c0_103, %c0_104] : memref<2x32x32xf32, #tpu.memory_space<vmem>>, vector<1x32x32xf32>
    %125 = vector.shape_cast %124 : vector<1x32x32xf32> to vector<32x32xf32>
    %cst_105 = arith.constant dense<0.000000e+00> : vector<8x32xf32>
    %126 = tpu.matmul %123, %125, %cst_105 {dimension_numbers = #tpu.dot_dimension_numbers<[1], [0], [0], [1], [0, 0, 1, 1], [], []>} : vector<8x32xf32>, vector<32x32xf32>, vector<8x32xf32> -> vector<8x32xf32>
    %c1_106 = arith.constant 1 : index
    %c0_107 = arith.constant 0 : index
    %c0_108 = arith.constant 0 : index
    %127 = vector.load %arg2[%c1_106, %c0_107, %c0_108] : memref<2x32x32xf32, #tpu.memory_space<vmem>>, vector<1x32x32xf32>
    %128 = vector.shape_cast %127 : vector<1x32x32xf32> to vector<32x32xf32>
    %cst_109 = arith.constant dense<0.000000e+00> : vector<8x32xf32>
    %129 = tpu.matmul %117, %128, %cst_109 {dimension_numbers = #tpu.dot_dimension_numbers<[1], [0], [0], [1], [0, 0, 1, 1], [], []>} : vector<8x32xf32>, vector<32x32xf32>, vector<8x32xf32> -> vector<8x32xf32>
    %130 = arith.addf %126, %129 : vector<8x32xf32>
    %c1_110 = arith.constant 1 : index
    %c0_111 = arith.constant 0 : index
    %c0_112 = arith.constant 0 : index
    %131 = vector.load %arg3[%c1_110, %c0_111, %c0_112] : memref<2x1x32xf32, #tpu.memory_space<vmem>>, vector<1x1x32xf32>
    %132 = vector.shape_cast %131 : vector<1x1x32xf32> to vector<1x32xf32>
    %133 = vector.broadcast %132 : vector<1x32xf32> to vector<8x32xf32>
    %134 = arith.addf %130, %133 : vector<8x32xf32>
    %135 = math.tanh %134 : vector<8x32xf32>
    %c0_113 = arith.constant 0 : index
    %c0_114 = arith.constant 0 : index
    %c0_115 = arith.constant 0 : index
    %136 = vector.load %arg2[%c0_113, %c0_114, %c0_115] : memref<2x32x32xf32, #tpu.memory_space<vmem>>, vector<1x32x32xf32>
    %137 = vector.shape_cast %136 : vector<1x32x32xf32> to vector<32x32xf32>
    %cst_116 = arith.constant dense<0.000000e+00> : vector<8x32xf32>
    %138 = tpu.matmul %123, %137, %cst_116 {dimension_numbers = #tpu.dot_dimension_numbers<[1], [0], [0], [1], [0, 0, 1, 1], [], []>} : vector<8x32xf32>, vector<32x32xf32>, vector<8x32xf32> -> vector<8x32xf32>
    %139 = vector.extract_strided_slice %7 {offsets = [56, 0], sizes = [8, 32], strides = [1, 1]} : vector<64x32xf32> to vector<8x32xf32>
    %140 = arith.addf %138, %139 : vector<8x32xf32>
    %141 = math.tanh %140 : vector<8x32xf32>
    %c1_117 = arith.constant 1 : index
    %c0_118 = arith.constant 0 : index
    %c0_119 = arith.constant 0 : index
    %142 = vector.load %arg1[%c1_117, %c0_118, %c0_119] : memref<2x32x32xf32, #tpu.memory_space<vmem>>, vector<1x32x32xf32>
    %143 = vector.shape_cast %142 : vector<1x32x32xf32> to vector<32x32xf32>
    %cst_120 = arith.constant dense<0.000000e+00> : vector<8x32xf32>
    %144 = tpu.matmul %141, %143, %cst_120 {dimension_numbers = #tpu.dot_dimension_numbers<[1], [0], [0], [1], [0, 0, 1, 1], [], []>} : vector<8x32xf32>, vector<32x32xf32>, vector<8x32xf32> -> vector<8x32xf32>
    %c1_121 = arith.constant 1 : index
    %c0_122 = arith.constant 0 : index
    %c0_123 = arith.constant 0 : index
    %145 = vector.load %arg2[%c1_121, %c0_122, %c0_123] : memref<2x32x32xf32, #tpu.memory_space<vmem>>, vector<1x32x32xf32>
    %146 = vector.shape_cast %145 : vector<1x32x32xf32> to vector<32x32xf32>
    %cst_124 = arith.constant dense<0.000000e+00> : vector<8x32xf32>
    %147 = tpu.matmul %135, %146, %cst_124 {dimension_numbers = #tpu.dot_dimension_numbers<[1], [0], [0], [1], [0, 0, 1, 1], [], []>} : vector<8x32xf32>, vector<32x32xf32>, vector<8x32xf32> -> vector<8x32xf32>
    %148 = arith.addf %144, %147 : vector<8x32xf32>
    %c1_125 = arith.constant 1 : index
    %c0_126 = arith.constant 0 : index
    %c0_127 = arith.constant 0 : index
    %149 = vector.load %arg3[%c1_125, %c0_126, %c0_127] : memref<2x1x32xf32, #tpu.memory_space<vmem>>, vector<1x1x32xf32>
    %150 = vector.shape_cast %149 : vector<1x1x32xf32> to vector<1x32xf32>
    %151 = vector.broadcast %150 : vector<1x32xf32> to vector<8x32xf32>
    %152 = arith.addf %148, %151 : vector<8x32xf32>
    %153 = math.tanh %152 : vector<8x32xf32>
    %154 = tpu.concatenate %99, %117, %135, %153 in 0 : vector<8x32xf32>, vector<8x32xf32>, vector<8x32xf32>, vector<8x32xf32> -> vector<32x32xf32>
    %c0_128 = arith.constant 0 : index
    %c0_129 = arith.constant 0 : index
    %155 = vector.load %arg4[%c0_128, %c0_129] : memref<32x8xf32, #tpu.memory_space<vmem>>, vector<32x8xf32>
    %cst_130 = arith.constant dense<0.000000e+00> : vector<32x8xf32>
    %156 = tpu.matmul %154, %155, %cst_130 {dimension_numbers = #tpu.dot_dimension_numbers<[1], [0], [0], [1], [0, 0, 1, 1], [], []>} : vector<32x32xf32>, vector<32x8xf32>, vector<32x8xf32> -> vector<32x8xf32>
    %c0_131 = arith.constant 0 : index
    %c0_132 = arith.constant 0 : index
    %157 = vector.load %arg5[%c0_131, %c0_132] : memref<1x8xf32, #tpu.memory_space<vmem>>, vector<1x8xf32>
    %158 = vector.broadcast %157 : vector<1x8xf32> to vector<32x8xf32>
    %159 = arith.addf %156, %158 : vector<32x8xf32>
    %c0_133 = arith.constant 0 : index
    %c0_134 = arith.constant 0 : index
    %160 = vector.load %arg6[%c0_133, %c0_134] : memref<32x8xf32, #tpu.memory_space<vmem>>, vector<32x8xf32>
    tpu.vector_store %arg6[%c0_133, %c0_134], %159 {strides = array<i32>} : memref<32x8xf32, #tpu.memory_space<vmem>>, vector<32x8xf32>,
    return
  }
}

</mosaic_0001>

<bundles_post_ra>
// kernel: tpu_custom_call.1
= control target key start
LH: loop header
LB: loop body
LE: loop exit
PB: predicated region body
PF: predicated region fallthrough
CT: control target
= control target key end

     0   :  { %vm42_vm0 = vcmask 261120   ;;  %v2580_v8 = vmov 0.0   ;;  %vm2581_vm1 = vmmov 0   ;;  %vm2045_vm2 = vcmask 64512   ;;  %s3061_s1 = inlined_call_operand.vmem [shape: f32[2,32,32], index: 1, kind: input, shape index: {}]   ;;  %s3062_s0 = inlined_call_operand.vmem [shape: f32[64,32], index: 0, kind: input, shape index: {}]   ;;  %s3063_s2 = inlined_call_operand.vmem [shape: f32[2,32,32], index: 2, kind: input, shape index: {}]   ;;  %s3064_s3 = inlined_call_operand.vmem [shape: f32[2,1,32], index: 3, kind: input, shape index: {}]   ;;  %s3065_s4 = inlined_call_operand.vmem [shape: f32[32,8], index: 4, kind: input, shape index: {}]   ;;  %s3066_s5 = inlined_call_operand.vmem [shape: f32[1,8], index: 5, kind: input, shape index: {}]   ;;  %s3067_s6 = inlined_call_operand.vmem [shape: f32[32,8], index: 6, kind: output, shape index: {}]  }
   0x1   :  { %v34_v0 = vld [vmem:[%s3061_s1 + $0x18] sm:$0xff]  ;;  %v33_v1 = vld [vmem:[%s3061_s1 + $0x10] sm:$0xff]  ;;  %v32_v2 = vld [vmem:[%s3061_s1 + $0x8] sm:$0xff] }
   0x2   :  { %2538 = vmatprep.subr.mxu1 %v34_v0  ;;  %2240 = vmatprep.subr.mxu0 %v34_v0  ;;  %v27_v3 = vld [vmem:[%s3062_s0 + $0x20] sm:$0xff]  ;;  %v28_v5 = vld [vmem:[%s3062_s0 + $0x28] sm:$0xff]  ;;  %v2639_v6 = vld [vmem:[%s3063_s2 + $0x18] sm:$0xff] }
   0x3   :  { %2542 = vmatpush3.msra.mxu1 %v34_v0  ;;  %2241 = vmatpush3.msra.mxu0 %v34_v0  ;;  %v31_v4 = vld [vmem:[%s3061_s1] sm:$0xff]  ;;  %v24_v9 = vld [vmem:[%s3062_s0 + $0x8] sm:$0xff]  ;;  %v29_v10 = vld [vmem:[%s3062_s0 + $0x30] sm:$0xff] }
   0x4   :  { %2539 = vmatprep.subr.mxu1 %v33_v1  ;;  %2242 = vmatprep.subr.mxu0 %v33_v1  ;;  %v23_v7 = vld [vmem:[%s3062_s0] sm:$0xff]  ;;  %v2656_v11 = vld [vmem:[%s3063_s2 + $0x10] sm:$0xff]  ;;  %v30_v12 = vld [vmem:[%s3062_s0 + $0x38] sm:$0xff] }
   0x5   :  { %2543 = vmatpush3.msra.mxu1 %v33_v1  ;;  %2243 = vmatpush3.msra.mxu0 %v33_v1  ;;  %v2668_v13 = vld [vmem:[%s3063_s2 + $0x8] sm:$0xff]  ;;  %v2677_v14 = vld [vmem:[%s3063_s2] sm:$0xff]  ;;  %v2691_v15 = vld [vmem:[%s3063_s2 + $0x38] sm:$0xff] }
   0x6   :  { %2540 = vmatprep.subr.mxu1 %v32_v2  ;;  %2244 = vmatprep.subr.mxu0 %v32_v2  ;;  %v2698_v16 = vld [vmem:[%s3063_s2 + $0x30] sm:$0xff]  ;;  %v2703_v17 = vld [vmem:[%s3063_s2 + $0x28] sm:$0xff]  ;;  %v2709_v18 = vld [vmem:[%s3061_s1 + $0x38] sm:$0xff] }
   0x7   :  { %2544 = vmatpush3.msra.mxu1 %v32_v2  ;;  %2254 = vmatprep.mubr.msk.f32.mxu1 %vm42_vm0, %v27_v3  ;;  %v25_v19 = vld [vmem:[%s3062_s0 + $0x10] sm:$0xff]  ;;  %v2718_v20 = vld [vmem:[%s3063_s2 + $0x20] sm:$0xff]  ;;  %v26_v21 = vld [vmem:[%s3062_s0 + $0x18] sm:$0xff] }
   0x8   :  { %2541 = vmatprep.subr.mxu1 %v31_v4  ;;  %2245 = vmatpush3.msra.mxu0 %v32_v2  ;;  %v2731_v22 = vld [vmem:[%s3061_s1 + $0x30] sm:$0xff]  ;;  %v2740_v23 = vld [vmem:[%s3061_s1 + $0x28] sm:$0xff]  ;;  %v2749_v24 = vld [vmem:[%s3061_s1 + $0x20] sm:$0xff] }
   0x9   :  { %2545 = vmatpush3.msra.mxu1 %v31_v4  ;;  %2246 = vmatprep.subr.mxu0 %v31_v4  ;;  %v2774_v30 = vld [vmem:[%s3064_s3] ss:$0 sm:$0xff]  ;;  %v2807_v43 = vld [vmem:[%s3064_s3 + $0x1] ss:$0 sm:$0xff] }
   0xa   :  { %2255 = vmatmul.mubr.msk.f32.vlgmr.msra.gmra.mxu1 %vm42_vm0, %v28_v5  ;;  %2260 = vmatprep.subr.mxu1 %v2580_v8 }
   0xb   :  { %2261 = vmatpush3.msra.mxu1 %v2639_v6  ;;  %2247 = vmatpush3.msra.mxu0 %v31_v4 }
   0xc   :  { %2248 = vmatprep.mubr.msk.f32.mxu0 %vm42_vm0, %v23_v7  ;;  %2262 = vmatprep.subr.mxu1 %v2580_v8 }
   0xd   :  { %2249 = vmatmul.mubr.msk.f32.vlgmr.msra.gmra.mxu0 %vm42_vm0, %v24_v9  ;;  %2257 = vmatprep.mubr.msk.f32.mxu1 %vm42_vm0, %v29_v10 }
   0xe   :  { %2263 = vmatpush3.msra.mxu1 %v2656_v11  ;;  %2282 = vmatprep.subr.mxu0 %v2580_v8 }
   0xf   :  { %2258 = vmatmul.mubr.msk.f32.gmra.mxu1 %vm42_vm0, %v30_v12  ;;  %2264 = vmatprep.subr.mxu1 %v2580_v8 }
  0x10   :  { %2265 = vmatpush3.msra.mxu1 %v2668_v13  ;;  %2268 = vmatprep.mubr.msk.f32.mxu1 %vm2581_vm1, %v2580_v8 }
  0x11   :  { %2266 = vmatprep.subr.mxu1 %v2580_v8  ;;  %2283 = vmatpush3.msra.mxu0 %v2709_v18 }
  0x12   :  { %2267 = vmatpush3.msra.mxu1 %v2677_v14  ;;  %2251 = vmatprep.mubr.msk.f32.mxu0 %vm42_vm0, %v25_v19 }
  0x13   :  { %2269 = vmatmul.mubr.f32.vlgmr.msra.gmra.mxu1 %v2580_v8  ;;  %2271 = vmatprep.subr.mxu1 %v2580_v8 }
  0x14   :  { %2279 = vmatprep.mubr.msk.f32.mxu1 %vm2581_vm1, %v2580_v8  ;;  %2272 = vmatpush3.msra.mxu1 %v2691_v15 }
  0x15   :  { %2273 = vmatprep.subr.mxu1 %v2580_v8  ;;  %2284 = vmatprep.subr.mxu0 %v2580_v8 }
  0x16   :  { %2274 = vmatpush3.msra.mxu1 %v2698_v16  ;;  %2252 = vmatmul.mubr.msk.f32.gmra.mxu0 %vm42_vm0, %v26_v21 }
  0x17   :  { %2275 = vmatprep.subr.mxu1 %v2580_v8  ;;  %2285 = vmatpush3.msra.mxu0 %v2731_v22 }
  0x18   :  { %2276 = vmatpush3.msra.mxu1 %v2703_v17  ;;  %2286 = vmatprep.subr.mxu0 %v2580_v8 }
  0x19   :  { %2277 = vmatprep.subr.mxu1 %v2580_v8  ;;  %2287 = vmatpush3.msra.mxu0 %v2740_v23 }
  0x1a   :  { %2278 = vmatpush3.msra.mxu1 %v2718_v20  ;;  %2288 = vmatprep.subr.mxu0 %v2580_v8 }
  0x1b   :  { %2293 = vmatprep.subr.mxu1 %v2580_v8  ;;  %2280 = vmatmul.mubr.f32.vlgmr.msra.gmra.mxu1 %v2580_v8 }
  0x1c   :  { %2294 = vmatpush3.msra.mxu1 %v2639_v6  ;;  %2289 = vmatpush3.msra.mxu0 %v2749_v24 }
  0x1d   :  { %2295 = vmatprep.subr.mxu1 %v2580_v8  ;;  %2290 = vmatprep.mubr.msk.f32.mxu0 %vm2581_vm1, %v2580_v8 }
  0x1e   :  { %2296 = vmatpush3.msra.mxu1 %v2656_v11  ;;  %2301 = vmatprep.mubr.msk.f32.mxu1 %vm2581_vm1, %v2580_v8 }
  0x1f   :  { %2297 = vmatprep.subr.mxu1 %v2580_v8  ;;  %2304 = vmatprep.subr.mxu0 %v2580_v8 }
  0x20   :  { %2298 = vmatpush3.msra.mxu1 %v2668_v13 }
  0x21   :  { %2299 = vmatprep.subr.mxu1 %v2580_v8 }
  0x22   :  { %2300 = vmatpush3.msra.mxu1 %v2677_v14 }
  0x23   :  { %2315 = vmatprep.subr.mxu1 %v2580_v8 }
  0xca   :  { %v2765_v25 = vpop.f32.mrf.mxu1 }
  0xcc   :  { %v2767_v26 = vpop.f32.mrf.mxu1 }
  0xcd   :  { %v2250_v27 = vpop.f32.mrf.mxu0 }
  0xce   :  { %v139_v41 = vadd.f32 %v2250_v27, %v2774_v30 }
  0xcf   :  { %v2769_v28 = vpop.f32.mrf.mxu1  ;;  %v133_v29 = vpop.f32.mrf.mxu0 }
  0xd0   :  { %v134_v32 = vadd.f32 %v2774_v30, %v133_v29 }
  0xd1   :  { %v2776_v31 = vpop.f32.mrf.mxu1 }
  0xd3   :  { %v245_v33 = vpop.f32.mrf.mxu1 }
  0xd4   :  { %v246_v34 = vadd.f32 %v245_v33, %v134_v32 }
  0xd5   :  { %v2270_v35 = vpop.f32.mrf.mxu1 }
  0xd6   :  { %2548 = vtanh.f32 %v246_v34  ;;  %v2801_v39 = vpop.f32.mrf.mxu0 }
  0xd7   :  { %v149_v3 = vadd.f32 %v2801_v39, %v2774_v30 }
  0xd8   :  { %v143_v40 = vpop.f32.mrf.mxu0 }
  0xd9   :  { %v144_v58 = vadd.f32 %v2774_v30, %v143_v40 }
  0xdb   :  { %v326_v37 = vpop.f32.mrf.mxu1 }
  0xdd   :  { %v2281_v38 = vpop.f32.mrf.mxu1 }
  0xe3   :  { %v2549_v36 = vpop.eup %2548 }
  0xe4   :  { %2291 = vmatmul.mubr.msk.f32.vlgmr.msra.gmra.mxu0 %vm42_vm0, %v2549_v36  ;;  %2302 = vmatmul.mubr.msk.f32.vlgmr.msra.gmra.mxu1 %vm42_vm0, %v2549_v36  ;;  %v154_v36 = vadd.f32 %v2774_v30, %v2767_v26 }
  0xe5   :  { %2316 = vmatpush3.msra.mxu1 %v2709_v18  ;;  %2305 = vmatpush3.msra.mxu0 %v2691_v15 }
  0xe6   :  { %2317 = vmatprep.subr.mxu1 %v2580_v8  ;;  %2306 = vmatprep.subr.mxu0 %v2580_v8 }
  0xe7   :  { %2318 = vmatpush3.msra.mxu1 %v2731_v22  ;;  %2307 = vmatpush3.msra.mxu0 %v2698_v16 }
  0xe8   :  { %2319 = vmatprep.subr.mxu1 %v2580_v8  ;;  %2308 = vmatprep.subr.mxu0 %v2580_v8 }
  0xe9   :  { %2320 = vmatpush3.msra.mxu1 %v2740_v23  ;;  %2309 = vmatpush3.msra.mxu0 %v2703_v17 }
  0xea   :  { %2321 = vmatprep.subr.mxu1 %v2580_v8  ;;  %2310 = vmatprep.subr.mxu0 %v2580_v8 }
  0xeb   :  { %2322 = vmatpush3.msra.mxu1 %v2749_v24  ;;  %2323 = vmatprep.mubr.msk.f32.mxu1 %vm2581_vm1, %v2580_v8 }
  0xec   :  { %2311 = vmatpush3.msra.mxu0 %v2718_v20  ;;  %2312 = vmatprep.mubr.msk.f32.mxu0 %vm2581_vm1, %v2580_v8 }
  0xed   :  { %2326 = vmatprep.subr.mxu0 %v2580_v8  ;;  %2337 = vmatprep.subr.mxu1 %v2580_v8 }
 0x1a4   :  { %v399_v42 = vpop.f32.mrf.mxu0  ;;  %v479_v44 = vpop.f32.mrf.mxu1 }
 0x1a5   :  { %v400_v45 = vadd.f32 %v399_v42, %v326_v37  ;;  %v480_v46 = vadd.f32 %v479_v44, %v139_v41 }
 0x1a6   :  { %v2292_v47 = vpop.f32.mrf.mxu0  ;;  %v2303_v48 = vpop.f32.mrf.mxu1 }
 0x1a7   :  { %v411_v49 = vadd.f32 %v2807_v43, %v400_v45  ;;  %2550 = vtanh.f32 %v480_v46  ;;  %v159_v46 = vadd.f32 %v2765_v25, %v2774_v30 }
 0x1a9   :  { %2552 = vtanh.f32 %v411_v49 }
 0x1b4   :  { %v2551_v50 = vpop.eup %2550 }
 0x1b5   :  { %2324 = vmatmul.mubr.msk.f32.vlgmr.msra.gmra.mxu1 %vm42_vm0, %v2551_v50 }
 0x1b6   :  { %v2553_v51 = vpop.eup %2552  ;;  %2338 = vmatpush3.msra.mxu1 %v2691_v15  ;;  %2345 = vmatprep.mubr.msk.f32.mxu1 %vm2581_vm1, %v2580_v8 }
 0x1b7   :  { %2313 = vmatmul.mubr.msk.f32.vlgmr.msra.gmra.mxu0 %vm42_vm0, %v2553_v51  ;;  %2339 = vmatprep.subr.mxu1 %v2580_v8 }
 0x1b8   :  { %2327 = vmatpush3.msra.mxu0 %v2639_v6  ;;  %2334 = vmatprep.mubr.msk.f32.mxu0 %vm2581_vm1, %v2580_v8 }
 0x1b9   :  { %2328 = vmatprep.subr.mxu0 %v2580_v8  ;;  %2340 = vmatpush3.msra.mxu1 %v2698_v16 }
 0x1ba   :  { %2329 = vmatpush3.msra.mxu0 %v2656_v11  ;;  %2341 = vmatprep.subr.mxu1 %v2580_v8 }
 0x1bb   :  { %2330 = vmatprep.subr.mxu0 %v2580_v8  ;;  %2342 = vmatpush3.msra.mxu1 %v2703_v17 }
 0x1bc   :  { %2331 = vmatpush3.msra.mxu0 %v2668_v13  ;;  %2343 = vmatprep.subr.mxu1 %v2580_v8 }
 0x1bd   :  { %2332 = vmatprep.subr.mxu0 %v2580_v8  ;;  %2344 = vmatpush3.msra.mxu1 %v2718_v20 }
 0x1be   :  { %2333 = vmatpush3.msra.mxu0 %v2677_v14  ;;  %2359 = vmatprep.subr.mxu1 %v2580_v8 }
 0x1bf   :  { %2335 = vmatmul.mubr.msk.f32.vlgmr.msra.gmra.mxu0 %vm42_vm0, %v2551_v50  ;;  %2348 = vmatprep.subr.mxu0 %v2580_v8 }
 0x1c0   :  { %2349 = vmatpush3.msra.mxu0 %v2709_v18  ;;  %2356 = vmatprep.mubr.msk.f32.mxu0 %vm2581_vm1, %v2580_v8 }
 0x1c1   :  { %2350 = vmatprep.subr.mxu0 %v2580_v8 }
 0x1c2   :  { %2351 = vmatpush3.msra.mxu0 %v2731_v22 }
 0x1c3   :  { %2352 = vmatprep.subr.mxu0 %v2580_v8 }
 0x1c4   :  { %2353 = vmatpush3.msra.mxu0 %v2740_v23 }
 0x1c5   :  { %2354 = vmatprep.subr.mxu0 %v2580_v8 }
 0x1c6   :  { %2355 = vmatpush3.msra.mxu0 %v2749_v24 }
 0x1c7   :  { %2370 = vmatprep.subr.mxu0 %v2580_v8 }
 0x275   :  { %v626_v52 = vpop.f32.mrf.mxu1 }
 0x277   :  { %v553_v53 = vpop.f32.mrf.mxu0  ;;  %v2325_v54 = vpop.f32.mrf.mxu1 }
 0x278   :  { %v627_v55 = vadd.f32 %v626_v52, %v553_v53 }
 0x279   :  { %v2314_v56 = vpop.f32.mrf.mxu0 }
 0x27a   :  { %v630_v57 = vadd.f32 %v2807_v43, %v627_v55 }
 0x27c   :  { %2554 = vtanh.f32 %v630_v57 }
 0x27f   :  { %v698_v59 = vpop.f32.mrf.mxu0 }
 0x280   :  { %v699_v60 = vadd.f32 %v698_v59, %v144_v58  ;;  %v164_v59 = vadd.f32 %v2774_v30, %v2776_v31 }
 0x281   :  { %v2336_v61 = vpop.f32.mrf.mxu0 }
 0x282   :  { %2556 = vtanh.f32 %v699_v60 }
 0x289   :  { %v2555_v62 = vpop.eup %2554 }
 0x28a   :  { %2346 = vmatmul.mubr.msk.f32.vlgmr.msra.gmra.mxu1 %vm42_vm0, %v2555_v62 }
 0x28b   :  { %2360 = vmatpush3.msra.mxu1 %v2639_v6  ;;  %2367 = vmatprep.mubr.msk.f32.mxu1 %vm2581_vm1, %v2580_v8 }
 0x28c   :  { %2361 = vmatprep.subr.mxu1 %v2580_v8 }
 0x28d   :  { %2362 = vmatpush3.msra.mxu1 %v2656_v11 }
 0x28e   :  { %2363 = vmatprep.subr.mxu1 %v2580_v8 }
 0x28f   :  { %v2557_v63 = vpop.eup %2556  ;;  %2364 = vmatpush3.msra.mxu1 %v2668_v13 }
 0x290   :  { %2357 = vmatmul.mubr.msk.f32.vlgmr.msra.gmra.mxu0 %vm42_vm0, %v2557_v63  ;;  %2365 = vmatprep.subr.mxu1 %v2580_v8 }
 0x291   :  { %2366 = vmatpush3.msra.mxu1 %v2677_v14  ;;  %2371 = vmatpush3.msra.mxu0 %v2691_v15 }
 0x292   :  { %2368 = vmatmul.mubr.msk.f32.vlgmr.msra.gmra.mxu1 %vm42_vm0, %v2557_v63  ;;  %2381 = vmatprep.subr.mxu1 %v2580_v8 }
 0x293   :  { %2372 = vmatprep.subr.mxu0 %v2580_v8  ;;  %2382 = vmatpush3.msra.mxu1 %v2709_v18 }
 0x294   :  { %2373 = vmatpush3.msra.mxu0 %v2698_v16  ;;  %2383 = vmatprep.subr.mxu1 %v2580_v8 }
 0x295   :  { %2374 = vmatprep.subr.mxu0 %v2580_v8  ;;  %2384 = vmatpush3.msra.mxu1 %v2731_v22 }
 0x296   :  { %2375 = vmatpush3.msra.mxu0 %v2703_v17  ;;  %2385 = vmatprep.subr.mxu1 %v2580_v8 }
 0x297   :  { %2376 = vmatprep.subr.mxu0 %v2580_v8  ;;  %2386 = vmatpush3.msra.mxu1 %v2740_v23 }
 0x298   :  { %2377 = vmatpush3.msra.mxu0 %v2718_v20  ;;  %2387 = vmatprep.subr.mxu1 %v2580_v8 }
 0x299   :  { %2378 = vmatprep.mubr.msk.f32.mxu0 %vm2581_vm1, %v2580_v8  ;;  %2388 = vmatpush3.msra.mxu1 %v2749_v24 }
 0x29a   :  { %2389 = vmatprep.mubr.msk.f32.mxu1 %vm2581_vm1, %v2580_v8  ;;  %2392 = vmatprep.subr.mxu0 %v2580_v8 }
 0x29b   :  { %2403 = vmatprep.subr.mxu1 %v2580_v8 }
 0x34a   :  { %v772_v0 = vpop.f32.mrf.mxu1 }
 0x34c   :  { %v2347_v1 = vpop.f32.mrf.mxu1 }
 0x350   :  { %v845_v2 = vpop.f32.mrf.mxu0 }
 0x351   :  { %v846_v4 = vadd.f32 %v845_v2, %v772_v0 }
 0x352   :  { %v2358_v5 = vpop.f32.mrf.mxu0  ;;  %v917_v7 = vpop.f32.mrf.mxu1 }
 0x353   :  { %v849_v9 = vadd.f32 %v2807_v43, %v846_v4  ;;  %v918_v10 = vadd.f32 %v917_v7, %v149_v3 }
 0x354   :  { %v2369_v12 = vpop.f32.mrf.mxu1 }
 0x355   :  { %2558 = vtanh.f32 %v849_v9  ;;  %v2095_v9 = vld [vmem:[%s3066_s5] ss:$0 sm:$0xff] }
 0x356   :  { %2560 = vtanh.f32 %v918_v10 }
 0x362   :  { %v2559_v19 = vpop.eup %2558 }
 0x363   :  { %v2561_v21 = vpop.eup %2560  ;;  %2379 = vmatmul.mubr.msk.f32.vlgmr.msra.gmra.mxu0 %vm42_vm0, %v2559_v19 }
 0x364   :  { %2390 = vmatmul.mubr.msk.f32.vlgmr.msra.gmra.mxu1 %vm42_vm0, %v2561_v21  ;;  %2393 = vmatpush3.msra.mxu0 %v2639_v6 }
 0x365   :  { %2394 = vmatprep.subr.mxu0 %v2580_v8  ;;  %2400 = vmatprep.mubr.msk.f32.mxu0 %vm2581_vm1, %v2580_v8 }
 0x366   :  { %2395 = vmatpush3.msra.mxu0 %v2656_v11  ;;  %2404 = vmatpush3.msra.mxu1 %v2691_v15 }
 0x367   :  { %2396 = vmatprep.subr.mxu0 %v2580_v8  ;;  %2405 = vmatprep.subr.mxu1 %v2580_v8 }
 0x368   :  { %2397 = vmatpush3.msra.mxu0 %v2668_v13  ;;  %2406 = vmatpush3.msra.mxu1 %v2698_v16 }
 0x369   :  { %2398 = vmatprep.subr.mxu0 %v2580_v8  ;;  %2407 = vmatprep.subr.mxu1 %v2580_v8 }
 0x36a   :  { %2399 = vmatpush3.msra.mxu0 %v2677_v14  ;;  %2408 = vmatpush3.msra.mxu1 %v2703_v17 }
 0x36b   :  { %2401 = vmatmul.mubr.msk.f32.vlgmr.msra.gmra.mxu0 %vm42_vm0, %v2561_v21  ;;  %2409 = vmatprep.subr.mxu1 %v2580_v8 }
 0x36c   :  { %2414 = vmatprep.subr.mxu0 %v2580_v8  ;;  %2410 = vmatpush3.msra.mxu1 %v2718_v20 }
 0x36d   :  { %2415 = vmatpush3.msra.mxu0 %v2709_v18  ;;  %2411 = vmatprep.mubr.msk.f32.mxu1 %vm2581_vm1, %v2580_v8 }
 0x36e   :  { %2416 = vmatprep.subr.mxu0 %v2580_v8  ;;  %2425 = vmatprep.subr.mxu1 %v2580_v8 }
 0x36f   :  { %2417 = vmatpush3.msra.mxu0 %v2731_v22  ;;  %2422 = vmatprep.mubr.msk.f32.mxu0 %vm2581_vm1, %v2580_v8 }
 0x370   :  { %2418 = vmatprep.subr.mxu0 %v2580_v8 }
 0x371   :  { %2419 = vmatpush3.msra.mxu0 %v2740_v23 }
 0x372   :  { %2420 = vmatprep.subr.mxu0 %v2580_v8 }
 0x373   :  { %2421 = vmatpush3.msra.mxu0 %v2749_v24 }
 0x374   :  { %2436 = vmatprep.subr.mxu0 %v2580_v8 }
 0x423   :  { %v991_v27 = vpop.f32.mrf.mxu0 }
 0x424   :  { %v1064_v29 = vpop.f32.mrf.mxu1 }
 0x425   :  { %v1065_v32 = vadd.f32 %v1064_v29, %v991_v27  ;;  %v2380_v33 = vpop.f32.mrf.mxu0 }
 0x426   :  { %v2391_v34 = vpop.f32.mrf.mxu1 }
 0x427   :  { %v1068_v35 = vadd.f32 %v2807_v43, %v1065_v32 }
 0x429   :  { %2562 = vtanh.f32 %v1068_v35 }
 0x42b   :  { %v1136_v37 = vpop.f32.mrf.mxu0 }
 0x42c   :  { %v1137_v38 = vadd.f32 %v1136_v37, %v154_v36 }
 0x42d   :  { %v2402_v39 = vpop.f32.mrf.mxu0 }
 0x42e   :  { %2564 = vtanh.f32 %v1137_v38 }
 0x436   :  { %v2563_v40 = vpop.eup %2562 }
 0x437   :  { %2412 = vmatmul.mubr.msk.f32.vlgmr.msra.gmra.mxu1 %vm42_vm0, %v2563_v40 }
 0x438   :  { %2426 = vmatpush3.msra.mxu1 %v2639_v6  ;;  %2433 = vmatprep.mubr.msk.f32.mxu1 %vm2581_vm1, %v2580_v8 }
 0x439   :  { %2427 = vmatprep.subr.mxu1 %v2580_v8 }
 0x43a   :  { %2428 = vmatpush3.msra.mxu1 %v2656_v11 }
 0x43b   :  { %v2565_v41 = vpop.eup %2564  ;;  %2429 = vmatprep.subr.mxu1 %v2580_v8 }
 0x43c   :  { %2430 = vmatpush3.msra.mxu1 %v2668_v13  ;;  %2423 = vmatmul.mubr.msk.f32.vlgmr.msra.gmra.mxu0 %vm42_vm0, %v2565_v41 }
 0x43d   :  { %2431 = vmatprep.subr.mxu1 %v2580_v8  ;;  %2437 = vmatpush3.msra.mxu0 %v2691_v15 }
 0x43e   :  { %2432 = vmatpush3.msra.mxu1 %v2677_v14  ;;  %2438 = vmatprep.subr.mxu0 %v2580_v8 }
 0x43f   :  { %2434 = vmatmul.mubr.msk.f32.vlgmr.msra.gmra.mxu1 %vm42_vm0, %v2565_v41  ;;  %2447 = vmatprep.subr.mxu1 %v2580_v8 }
 0x440   :  { %2448 = vmatpush3.msra.mxu1 %v2709_v18  ;;  %2439 = vmatpush3.msra.mxu0 %v2698_v16 }
 0x441   :  { %2449 = vmatprep.subr.mxu1 %v2580_v8  ;;  %2440 = vmatprep.subr.mxu0 %v2580_v8 }
 0x442   :  { %2450 = vmatpush3.msra.mxu1 %v2731_v22  ;;  %2441 = vmatpush3.msra.mxu0 %v2703_v17 }
 0x443   :  { %2451 = vmatprep.subr.mxu1 %v2580_v8  ;;  %2442 = vmatprep.subr.mxu0 %v2580_v8 }
 0x444   :  { %2452 = vmatpush3.msra.mxu1 %v2740_v23  ;;  %2443 = vmatpush3.msra.mxu0 %v2718_v20 }
 0x445   :  { %2453 = vmatprep.subr.mxu1 %v2580_v8  ;;  %2444 = vmatprep.mubr.msk.f32.mxu0 %vm2581_vm1, %v2580_v8 }
 0x446   :  { %2454 = vmatpush3.msra.mxu1 %v2749_v24  ;;  %2455 = vmatprep.mubr.msk.f32.mxu1 %vm2581_vm1, %v2580_v8 }
 0x447   :  { %2458 = vmatprep.subr.mxu0 %v2580_v8  ;;  %2469 = vmatprep.subr.mxu1 %v2580_v8 }
 0x4f7   :  { %v1210_v26 = vpop.f32.mrf.mxu1 }
 0x4f9   :  { %v2413_v42 = vpop.f32.mrf.mxu1 }
 0x4fc   :  { %v1283_v44 = vpop.f32.mrf.mxu0 }
 0x4fd   :  { %v1284_v45 = vadd.f32 %v1283_v44, %v1210_v26 }
 0x4fe   :  { %v2424_v47 = vpop.f32.mrf.mxu0 }
 0x4ff   :  { %v1287_v48 = vadd.f32 %v2807_v43, %v1284_v45  ;;  %v1355_v49 = vpop.f32.mrf.mxu1 }
 0x500   :  { %v1356_v50 = vadd.f32 %v1355_v49, %v159_v46 }
 0x501   :  { %2566 = vtanh.f32 %v1287_v48  ;;  %v2435_v51 = vpop.f32.mrf.mxu1 }
 0x502   :  { %2568 = vtanh.f32 %v1356_v50 }
 0x50e   :  { %v2953_v52 = vpop.eup %2566 }
 0x50f   :  { %v2569_v53 = vpop.eup %2568  ;;  %2445 = vmatmul.mubr.msk.f32.vlgmr.msra.gmra.mxu0 %vm42_vm0, %v2953_v52 }
 0x510   :  { %2456 = vmatmul.mubr.msk.f32.vlgmr.msra.gmra.mxu1 %vm42_vm0, %v2569_v53  ;;  %2459 = vmatpush3.msra.mxu0 %v2639_v6 }
 0x511   :  { %2460 = vmatprep.subr.mxu0 %v2580_v8  ;;  %2466 = vmatprep.mubr.msk.f32.mxu0 %vm2581_vm1, %v2580_v8 }
 0x512   :  { %2461 = vmatpush3.msra.mxu0 %v2656_v11  ;;  %2470 = vmatpush3.msra.mxu1 %v2691_v15 }
 0x513   :  { %2462 = vmatprep.subr.mxu0 %v2580_v8  ;;  %2471 = vmatprep.subr.mxu1 %v2580_v8 }
 0x514   :  { %2463 = vmatpush3.msra.mxu0 %v2668_v13  ;;  %2472 = vmatpush3.msra.mxu1 %v2698_v16 }
 0x515   :  { %2464 = vmatprep.subr.mxu0 %v2580_v8  ;;  %2473 = vmatprep.subr.mxu1 %v2580_v8 }
 0x516   :  { %2465 = vmatpush3.msra.mxu0 %v2677_v14  ;;  %2474 = vmatpush3.msra.mxu1 %v2703_v17 }
 0x517   :  { %2467 = vmatmul.mubr.msk.f32.vlgmr.msra.gmra.mxu0 %vm42_vm0, %v2569_v53  ;;  %2475 = vmatprep.subr.mxu1 %v2580_v8 }
 0x518   :  { %2480 = vmatprep.subr.mxu0 %v2580_v8  ;;  %2476 = vmatpush3.msra.mxu1 %v2718_v20 }
 0x519   :  { %2481 = vmatpush3.msra.mxu0 %v2709_v18  ;;  %2477 = vmatprep.mubr.msk.f32.mxu1 %vm2581_vm1, %v2580_v8 }
 0x51a   :  { %2482 = vmatprep.subr.mxu0 %v2580_v8  ;;  %2491 = vmatprep.subr.mxu1 %v2580_v8 }
 0x51b   :  { %2483 = vmatpush3.msra.mxu0 %v2731_v22  ;;  %2488 = vmatprep.mubr.msk.f32.mxu0 %vm2581_vm1, %v2580_v8 }
 0x51c   :  { %2484 = vmatprep.subr.mxu0 %v2580_v8 }
 0x51d   :  { %2485 = vmatpush3.msra.mxu0 %v2740_v23 }
 0x51e   :  { %2486 = vmatprep.subr.mxu0 %v2580_v8 }
 0x51f   :  { %2487 = vmatpush3.msra.mxu0 %v2749_v24 }
 0x520   :  { %2502 = vmatprep.subr.mxu0 %v2580_v8 }
 0x5cf   :  { %v1429_v25 = vpop.f32.mrf.mxu0 }
 0x5d0   :  { %v1502_v54 = vpop.f32.mrf.mxu1 }
 0x5d1   :  { %v1503_v55 = vadd.f32 %v1502_v54, %v1429_v25  ;;  %v2446_v56 = vpop.f32.mrf.mxu0 }
 0x5d2   :  { %v2457_v57 = vpop.f32.mrf.mxu1 }
 0x5d3   :  { %v1506_v58 = vadd.f32 %v2807_v43, %v1503_v55 }
 0x5d5   :  { %2570 = vtanh.f32 %v1506_v58 }
 0x5d7   :  { %v1574_v60 = vpop.f32.mrf.mxu0 }
 0x5d8   :  { %v1575_v61 = vadd.f32 %v1574_v60, %v164_v59 }
 0x5d9   :  { %v2468_v62 = vpop.f32.mrf.mxu0 }
 0x5da   :  { %2572 = vtanh.f32 %v1575_v61 }
 0x5e2   :  { %v2571_v63 = vpop.eup %2570 }
 0x5e3   :  { %2478 = vmatmul.mubr.msk.f32.vlgmr.msra.gmra.mxu1 %vm42_vm0, %v2571_v63 }
 0x5e4   :  { %2492 = vmatpush3.msra.mxu1 %v2639_v6  ;;  %2499 = vmatprep.mubr.msk.f32.mxu1 %vm2581_vm1, %v2580_v8  ;;  %v1949_v6 = vld [vmem:[%s3065_s4 + $0x18] sm:$0xff] }
 0x5e5   :  { %2493 = vmatprep.subr.mxu1 %v2580_v8 }
 0x5e6   :  { %2494 = vmatpush3.msra.mxu1 %v2656_v11 }
 0x5e7   :  { %v2573_v0 = vpop.eup %2572  ;;  %2495 = vmatprep.subr.mxu1 %v2580_v8 }
 0x5e8   :  { %2496 = vmatpush3.msra.mxu1 %v2668_v13  ;;  %2489 = vmatmul.mubr.msk.f32.vlgmr.msra.gmra.mxu0 %vm42_vm0, %v2573_v0 }
 0x5e9   :  { %2497 = vmatprep.subr.mxu1 %v2580_v8  ;;  %2503 = vmatpush3.msra.mxu0 %v2691_v15 }
 0x5ea   :  { %2498 = vmatpush3.msra.mxu1 %v2677_v14  ;;  %2504 = vmatprep.subr.mxu0 %v2580_v8 }
 0x5eb   :  { %2500 = vmatmul.mubr.msk.f32.vlgmr.msra.gmra.mxu1 %vm42_vm0, %v2573_v0  ;;  %2513 = vmatprep.subr.mxu1 %v2580_v8 }
 0x5ec   :  { %2514 = vmatpush3.msra.mxu1 %v2709_v18  ;;  %2505 = vmatpush3.msra.mxu0 %v2698_v16  ;;  %v169_v16 = vadd.f32 %v2769_v28, %v2774_v30  ;;  %v1947_v28 = vld [vmem:[%s3065_s4 + $0x8] sm:$0xff]  ;;  %v1946_v30 = vld [vmem:[%s3065_s4] sm:$0xff] }
 0x5ed   :  { %2515 = vmatprep.subr.mxu1 %v2580_v8  ;;  %2506 = vmatprep.subr.mxu0 %v2580_v8 }
 0x5ee   :  { %2516 = vmatpush3.msra.mxu1 %v2731_v22  ;;  %2507 = vmatpush3.msra.mxu0 %v2703_v17 }
 0x5ef   :  { %2517 = vmatprep.subr.mxu1 %v2580_v8  ;;  %2508 = vmatprep.subr.mxu0 %v2580_v8 }
 0x5f0   :  { %2518 = vmatpush3.msra.mxu1 %v2740_v23  ;;  %2509 = vmatpush3.msra.mxu0 %v2718_v20 }
 0x5f1   :  { %2519 = vmatprep.subr.mxu1 %v2580_v8  ;;  %2510 = vmatprep.mubr.msk.f32.mxu0 %vm2581_vm1, %v2580_v8 }
 0x5f2   :  { %2520 = vmatpush3.msra.mxu1 %v2749_v24  ;;  %2521 = vmatprep.mubr.msk.f32.mxu1 %vm2581_vm1, %v2580_v8  ;;  %v1948_v24 = vld [vmem:[%s3065_s4 + $0x10] sm:$0xff] }
 0x5f3   :  { %2524 = vmatprep.subr.mxu0 %v1949_v6 }
 0x6a3   :  { %v1648_v11 = vpop.f32.mrf.mxu1 }
 0x6a5   :  { %v2479_v13 = vpop.f32.mrf.mxu1 }
 0x6a8   :  { %v1721_v14 = vpop.f32.mrf.mxu0 }
 0x6a9   :  { %v1722_v15 = vadd.f32 %v1721_v14, %v1648_v11 }
 0x6aa   :  { %v2490_v17 = vpop.f32.mrf.mxu0 }
 0x6ab   :  { %v1725_v18 = vadd.f32 %v2807_v43, %v1722_v15  ;;  %v1793_v20 = vpop.f32.mrf.mxu1 }
 0x6ac   :  { %v1794_v22 = vadd.f32 %v1793_v20, %v169_v16 }
 0x6ad   :  { %2574 = vtanh.f32 %v1725_v18  ;;  %v2501_v23 = vpop.f32.mrf.mxu1 }
 0x6ae   :  { %2576 = vtanh.f32 %v1794_v22 }
 0x6ba   :  { %v2575_v8 = vpop.eup %2574 }
 0x6bb   :  { %v2577_v31 = vpop.eup %2576  ;;  %2511 = vmatmul.mubr.msk.f32.vlgmr.msra.gmra.mxu0 %vm42_vm0, %v2575_v8 }
 0x6bc   :  { %2522 = vmatmul.mubr.msk.f32.vlgmr.msra.gmra.mxu1 %vm42_vm0, %v2577_v31  ;;  %2525 = vmatpush3.msra.mxu0 %v1949_v6 }
 0x6bd   :  { %2526 = vmatprep.subr.mxu0 %v1948_v24  ;;  %2532 = vmatprep.mubr.msk.f32.mxu0 %vm42_vm0, %v2953_v52 }
 0x6be   :  { %2527 = vmatpush3.msra.mxu0 %v1948_v24 }
 0x6bf   :  { %2528 = vmatprep.subr.mxu0 %v1947_v28 }
 0x6c0   :  { %2529 = vmatpush3.msra.mxu0 %v1947_v28 }
 0x6c1   :  { %2530 = vmatprep.subr.mxu0 %v1946_v30 }
 0x6c2   :  { %2531 = vmatpush3.msra.mxu0 %v1946_v30 }
 0x6c3   :  { %2533 = vmatmul.mubr.msk.f32.vlgmr.msra.gmra.mxu0 %vm42_vm0, %v2571_v63 }
 0x6c4   :  { %2535 = vmatprep.mubr.msk.f32.mxu0 %vm42_vm0, %v2575_v8 }
 0x77b   :  { %v1867_v1 = vpop.f32.mrf.mxu0 }
 0x77c   :  { %v1940_v2 = vpop.f32.mrf.mxu1 }
 0x77d   :  { %v1941_v3 = vadd.f32 %v1940_v2, %v1867_v1  ;;  %v2512_v4 = vpop.f32.mrf.mxu0 }
 0x77e   :  { %v2523_v5 = vpop.f32.mrf.mxu1 }
 0x77f   :  { %v1944_v7 = vadd.f32 %v2807_v43, %v1941_v3 }
 0x781   :  { %2578 = vtanh.f32 %v1944_v7 }
 0x783   :  { %v2534_v10 = vpop.f32.mrf.mxu0 }
 0x784   :  { %v2032_v12 = vadd.f32 %v2534_v10, %v2095_v9 }
 0x785   :  { %v2026_v19 = vpop.f32.mrf.mxu0 }
 0x786   :  { %2047 = vst.msk [vmem:[%s3067_s6 + $0x8] sm:$0xff] %vm2045_vm2, %v2032_v12  ;;  %v2027_v21 = vadd.f32 %v2095_v9, %v2026_v19 }
 0x788   :  { %2046 = vst.msk [vmem:[%s3067_s6] sm:$0xff] %vm2045_vm2, %v2027_v21 }
 0x78e   :  { %v2579_v27 = vpop.eup %2578 }
 0x78f   :  { %2536 = vmatmul.mubr.msk.f32.gmra.mxu0 %vm42_vm0, %v2579_v27 }
 0x84f   :  { %v2537_v43 = vpop.f32.mrf.mxu0 }
 0x850   :  { %v2042_v29 = vadd.f32 %v2537_v43, %v2095_v9 }
 0x851   :  { %v2036_v32 = vpop.f32.mrf.mxu0 }
 0x852   :  { %2049 = vst.msk [vmem:[%s3067_s6 + $0x18] sm:$0xff] %vm2045_vm2, %v2042_v29  ;;  %v2037_v33 = vadd.f32 %v2095_v9, %v2036_v32 }
 0x854   :  { %2048 = vst.msk [vmem:[%s3067_s6 + $0x10] sm:$0xff] %vm2045_vm2, %v2037_v33 }

</bundles_post_ra>
